<compile_context>
chip_gen: v7x
topology: tpu7x:2x2x1
jax: 0.10.0
libtpu: 0.0.40
codegen_flags: <defaults>
</compile_context>

<pallas_src>
import functools

import jax
import jax.numpy as jnp
from jax.experimental import pallas as pl
from jax.experimental.pallas import tpu as pltpu


def _copycell_kernel(x_ref, ctx_ref, w1x_ref, w1c_ref, b1_ref, w2_ref, b2_ref,
                     out_ref, *, hidden_size, branch_factor, mxu_dtype):
    H = hidden_size

    x_f32 = x_ref[...].astype(jnp.float32)          # exact copy path (x kept f32)
    x_m = x_ref[...].astype(mxu_dtype)              # MXU operand (VPU cast, cheap)
    ctx = ctx_ref[...]                               # already mxu_dtype

    # ---- Linear(2H -> H) + ReLU, as two K=H dots (dropout p=0 == identity) ----
    h = jnp.dot(x_m, w1x_ref[...], preferred_element_type=jnp.float32)
    h = h + jnp.dot(ctx, w1c_ref[...], preferred_element_type=jnp.float32)
    h = jnp.maximum(h + b1_ref[...], 0.0)            # f32 elementwise
    h = h.astype(mxu_dtype)

    # ---- Linear(H -> (bf+1)H): single dot, slice gate/cells in f32 ----
    # (bf+1)*H <= 128 lanes at these sizes, so the lane-offset slice is free-ish.
    o = jnp.dot(h, w2_ref[...], preferred_element_type=jnp.float32) + b2_ref[...]
    gate_lin = o[:, :H]
    cells = jnp.tanh(o[:, H:])                        # (tm, bf*H), activation=tanh

    gate = 0.5 * (jnp.tanh(0.5 * gate_lin) + 1.0)     # sigmoid via one EUP tanh
    gx = gate * x_f32                                 # (tm, H)
    og = 1.0 - gate                                   # (tm, H)

    # One full-width lane-dense store (no masked per-branch sub-stores).
    blended = jnp.concatenate(
        [gx + og * cells[:, b * H:(b + 1) * H] for b in range(branch_factor)],
        axis=-1)                                      # (tm, bf*H) f32
    out_ref[...] = blended.astype(out_ref.dtype)


def _pick_tm(M, *, cap=2048, target_steps=4):
    """Row-tile: amortize the ~0.35us/step overhead, keep >=2 steps per v7x core."""
    target = max(8, min(cap, ((pl.cdiv(M, target_steps) + 7) // 8) * 8))
    # Prefer a nearby multiple-of-8 tile that divides M -> no pad / unpad copies.
    if M % 8 == 0:
        tm = target
        while tm >= 8 and tm >= target - 32 * 8:
            if M % tm == 0:
                return tm
            tm -= 8
    return target


def copycell_forward(x, context, w1, b1, w2, b2, *, branch_factor,
                     tm=None, mxu_dtype=jnp.bfloat16, out_dtype=None):
    """x, context: (length, batch, hidden) -> (length, batch, branch_factor, hidden)."""
    L, B, H = x.shape
    M = L * B
    if out_dtype is None:
        out_dtype = x.dtype
    if tm is None:
        tm = _pick_tm(M)
    M_pad = tm * pl.cdiv(M, tm)

    x2 = x.reshape(M, H)                              # stays in caller dtype (f32)
    c2 = context.reshape(M, H).astype(mxu_dtype)
    if M_pad != M:
        x2 = jnp.pad(x2, ((0, M_pad - M), (0, 0)))
        c2 = jnp.pad(c2, ((0, M_pad - M), (0, 0)))

    # Wrapper-side split of W1 into the x-half and the context-half.
    w1x = w1[:H].astype(mxu_dtype)                    # (H, H)
    w1c = w1[H:].astype(mxu_dtype)                    # (H, H)
    b1_2d = b1.reshape(1, H).astype(jnp.float32)
    w2_m = w2.astype(mxu_dtype)                       # (H, (bf+1)H), kept merged (H < 128)
    b2_2d = b2.reshape(1, (branch_factor + 1) * H).astype(jnp.float32)

    kernel = functools.partial(_copycell_kernel, hidden_size=H,
                               branch_factor=branch_factor, mxu_dtype=mxu_dtype)

    # NOTE: at H=32 all residents fit trivially in VMEM on every generation.
    # If H is ever scaled up (H >= 128), split W2 back into gate/cells halves,
    # consider single-buffering (pl.Buffered(1)) the constant-index weight
    # BlockSpecs, and raise vmem_limit_bytes (v7x has only 64 MiB physical).
    out2 = pl.pallas_call(
        kernel,
        out_shape=jax.ShapeDtypeStruct((M_pad, branch_factor * H), out_dtype),
        grid_spec=pltpu.PrefetchScalarGridSpec(
            num_scalar_prefetch=0,
            grid=(M_pad // tm,),
            in_specs=[
                pl.BlockSpec((tm, H), lambda i: (i, 0)),                        # x (f32)
                pl.BlockSpec((tm, H), lambda i: (i, 0)),                        # context
                pl.BlockSpec((H, H), lambda i: (0, 0)),                         # W1_x
                pl.BlockSpec((H, H), lambda i: (0, 0)),                         # W1_ctx
                pl.BlockSpec((1, H), lambda i: (0, 0)),                         # b1
                pl.BlockSpec((H, (branch_factor + 1) * H), lambda i: (0, 0)),   # W2
                pl.BlockSpec((1, (branch_factor + 1) * H), lambda i: (0, 0)),   # b2
            ],
            out_specs=pl.BlockSpec((tm, branch_factor * H), lambda i: (i, 0)),
        ),
        compiler_params=pltpu.CompilerParams(
            dimension_semantics=("parallel",)),
    )(x2, c2, w1x, w1c, b1_2d, w2_m, b2_2d)

    if M_pad != M:
        out2 = out2[:M]
    return out2.reshape(L, B, branch_factor, H)


def copycell_reference(x, context, w1, b1, w2, b2, *, branch_factor):
    L, B, H = x.shape
    cat = jnp.concatenate([x, context], axis=-1)
    h = jnp.maximum(cat @ w1 + b1, 0.0)
    o = h @ w2 + b2
    gate = jax.nn.sigmoid(o[..., :H]).reshape(L, B, 1, H)
    cells = jnp.tanh(o[..., H:]).reshape(L, B, branch_factor, H)
    return gate * x[:, :, None, :] + (1.0 - gate) * cells


if __name__ == "__main__":
    # TODO(synk): dropout is assumed p=0 / eval mode (identity); kernel is not
    # valid for training with dropout enabled.
    H = 32
    branch_factor = 2

    key = jax.random.PRNGKey(0)
    kx, kc, k1, k2, k3, k4 = jax.random.split(key, 6)

    # Parameters (shapes from nn.Linear(2H, H) / nn.Linear(H, (bf+1)H)).
    w1 = jax.random.normal(k1, (2 * H, H), dtype=jnp.float32) * 0.05
    b1 = jax.random.normal(k2, (H,), dtype=jnp.float32) * 0.05
    w2 = jax.random.normal(k3, (H, (branch_factor + 1) * H), dtype=jnp.float32) * 0.05
    b2 = jax.random.normal(k4, ((branch_factor + 1) * H,), dtype=jnp.float32) * 0.05

    # ---- Small shape, exact f32 MXU path, f32 output ----
    L, B = 8, 2
    x = jax.random.normal(kx, (L, B, H), dtype=jnp.float32)
    context = jax.random.normal(kc, (L, B, H), dtype=jnp.float32)

    out = copycell_forward(x, context, w1, b1, w2, b2, branch_factor=branch_factor,
                           mxu_dtype=jnp.float32)
    out = jax.block_until_ready(out)
    ref = copycell_reference(x, context, w1, b1, w2, b2, branch_factor=branch_factor)
    assert out.shape == (L, B, branch_factor, H)
    assert jnp.allclose(out, ref, atol=2e-5, rtol=2e-5)

    # ---- Larger shape: default bf16 MXU operands, bf16 output, divisor tm ----
    L2, B2 = 100, 6                       # M = 600 -> tm = 120 (divides M), grid = 5
    x2 = jax.random.normal(kx, (L2, B2, H), dtype=jnp.float32)
    context2 = jax.random.normal(kc, (L2, B2, H), dtype=jnp.float32)

    out_bf = copycell_forward(x2, context2, w1, b1, w2, b2,
                              branch_factor=branch_factor, out_dtype=jnp.bfloat16)
    out_bf = jax.block_until_ready(out_bf)
    ref2 = copycell_reference(x2, context2, w1, b1, w2, b2, branch_factor=branch_factor)
    assert out_bf.shape == (L2, B2, branch_factor, H)
    assert jnp.allclose(out_bf.astype(jnp.float32), ref2, atol=5e-2, rtol=5e-2)

    print("KERNEL_OK")
</pallas_src>

<mosaic_0001>
module attributes {stable_mosaic.version = 11 : i64} {
  func.func @_copycell_kernel(%arg0: i32, %arg1: memref<8x32xf32, #tpu.memory_space<vmem>>, %arg2: memref<8x32xf32, #tpu.memory_space<vmem>>, %arg3: memref<32x32xf32, #tpu.memory_space<vmem>>, %arg4: memref<32x32xf32, #tpu.memory_space<vmem>>, %arg5: memref<1x32xf32, #tpu.memory_space<vmem>>, %arg6: memref<32x96xf32, #tpu.memory_space<vmem>>, %arg7: memref<1x96xf32, #tpu.memory_space<vmem>>, %arg8: memref<8x64xf32, #tpu.memory_space<vmem>>) attributes {dimension_semantics = [#tpu.dimension_semantics<parallel>], iteration_bounds = array<i64: 2>, scalar_prefetch = 0 : i64, scratch_operands = 0 : i64, tpu.core_type = #tpu.core_type<tc>, window_params = [{transform_indices = @transform_0, window_bounds = array<i64: 8, 32>}, {transform_indices = @transform_1, window_bounds = array<i64: 8, 32>}, {pipeline_mode = #tpu.pipeline_mode<synchronous>, transform_indices = @transform_2, window_bounds = array<i64: 32, 32>}, {pipeline_mode = #tpu.pipeline_mode<synchronous>, transform_indices = @transform_3, window_bounds = array<i64: 32, 32>}, {pipeline_mode = #tpu.pipeline_mode<synchronous>, transform_indices = @transform_4, window_bounds = array<i64: 1, 32>}, {pipeline_mode = #tpu.pipeline_mode<synchronous>, transform_indices = @transform_5, window_bounds = array<i64: 32, 96>}, {pipeline_mode = #tpu.pipeline_mode<synchronous>, transform_indices = @transform_6, window_bounds = array<i64: 1, 96>}, {transform_indices = @transform_7, window_bounds = array<i64: 8, 64>}]} {
    %c0 = arith.constant 0 : index
    %c0_0 = arith.constant 0 : index
    %0 = vector.load %arg1[%c0, %c0_0] : memref<8x32xf32, #tpu.memory_space<vmem>>, vector<8x32xf32>
    %c0_1 = arith.constant 0 : index
    %c0_2 = arith.constant 0 : index
    %1 = vector.load %arg1[%c0_1, %c0_2] : memref<8x32xf32, #tpu.memory_space<vmem>>, vector<8x32xf32>
    %c0_3 = arith.constant 0 : index
    %c0_4 = arith.constant 0 : index
    %2 = vector.load %arg2[%c0_3, %c0_4] : memref<8x32xf32, #tpu.memory_space<vmem>>, vector<8x32xf32>
    %c0_5 = arith.constant 0 : index
    %c0_6 = arith.constant 0 : index
    %3 = vector.load %arg3[%c0_5, %c0_6] : memref<32x32xf32, #tpu.memory_space<vmem>>, vector<32x32xf32>
    %cst = arith.constant dense<0.000000e+00> : vector<8x32xf32>
    %4 = tpu.matmul %1, %3, %cst {dimension_numbers = #tpu.dot_dimension_numbers<[1], [0], [0], [1], [0, 0, 1, 1], [], []>} : vector<8x32xf32>, vector<32x32xf32>, vector<8x32xf32> -> vector<8x32xf32>
    %c0_7 = arith.constant 0 : index
    %c0_8 = arith.constant 0 : index
    %5 = vector.load %arg4[%c0_7, %c0_8] : memref<32x32xf32, #tpu.memory_space<vmem>>, vector<32x32xf32>
    %cst_9 = arith.constant dense<0.000000e+00> : vector<8x32xf32>
    %6 = tpu.matmul %2, %5, %cst_9 {dimension_numbers = #tpu.dot_dimension_numbers<[1], [0], [0], [1], [0, 0, 1, 1], [], []>} : vector<8x32xf32>, vector<32x32xf32>, vector<8x32xf32> -> vector<8x32xf32>
    %7 = arith.addf %4, %6 : vector<8x32xf32>
    %c0_10 = arith.constant 0 : index
    %c0_11 = arith.constant 0 : index
    %8 = vector.load %arg5[%c0_10, %c0_11] : memref<1x32xf32, #tpu.memory_space<vmem>>, vector<1x32xf32>
    %9 = vector.broadcast %8 : vector<1x32xf32> to vector<8x32xf32>
    %10 = arith.addf %7, %9 : vector<8x32xf32>
    %cst_12 = arith.constant 0.000000e+00 : f32
    %11 = vector.broadcast %cst_12 : f32 to vector<8x32xf32>
    %12 = arith.maximumf %10, %11 : vector<8x32xf32>
    %c0_13 = arith.constant 0 : index
    %c0_14 = arith.constant 0 : index
    %13 = vector.load %arg6[%c0_13, %c0_14] : memref<32x96xf32, #tpu.memory_space<vmem>>, vector<32x96xf32>
    %cst_15 = arith.constant dense<0.000000e+00> : vector<8x96xf32>
    %14 = tpu.matmul %12, %13, %cst_15 {dimension_numbers = #tpu.dot_dimension_numbers<[1], [0], [0], [1], [0, 0, 1, 1], [], []>} : vector<8x32xf32>, vector<32x96xf32>, vector<8x96xf32> -> vector<8x96xf32>
    %c0_16 = arith.constant 0 : index
    %c0_17 = arith.constant 0 : index
    %15 = vector.load %arg7[%c0_16, %c0_17] : memref<1x96xf32, #tpu.memory_space<vmem>>, vector<1x96xf32>
    %16 = vector.broadcast %15 : vector<1x96xf32> to vector<8x96xf32>
    %17 = arith.addf %14, %16 : vector<8x96xf32>
    %18 = vector.extract_strided_slice %17 {offsets = [0, 0], sizes = [8, 32], strides = [1, 1]} : vector<8x96xf32> to vector<8x32xf32>
    %19 = vector.extract_strided_slice %17 {offsets = [0, 32], sizes = [8, 64], strides = [1, 1]} : vector<8x96xf32> to vector<8x64xf32>
    %20 = math.tanh %19 : vector<8x64xf32>
    %cst_18 = arith.constant 5.000000e-01 : f32
    %21 = vector.broadcast %cst_18 : f32 to vector<8x32xf32>
    %22 = arith.mulf %21, %18 : vector<8x32xf32>
    %23 = math.tanh %22 : vector<8x32xf32>
    %cst_19 = arith.constant 1.000000e+00 : f32
    %24 = vector.broadcast %cst_19 : f32 to vector<8x32xf32>
    %25 = arith.addf %23, %24 : vector<8x32xf32>
    %cst_20 = arith.constant 5.000000e-01 : f32
    %26 = vector.broadcast %cst_20 : f32 to vector<8x32xf32>
    %27 = arith.mulf %26, %25 : vector<8x32xf32>
    %28 = arith.mulf %27, %0 : vector<8x32xf32>
    %cst_21 = arith.constant 1.000000e+00 : f32
    %29 = vector.broadcast %cst_21 : f32 to vector<8x32xf32>
    %30 = arith.subf %29, %27 : vector<8x32xf32>
    %31 = vector.extract_strided_slice %20 {offsets = [0, 0], sizes = [8, 32], strides = [1, 1]} : vector<8x64xf32> to vector<8x32xf32>
    %32 = arith.mulf %30, %31 : vector<8x32xf32>
    %33 = arith.addf %28, %32 : vector<8x32xf32>
    %34 = vector.extract_strided_slice %20 {offsets = [0, 32], sizes = [8, 32], strides = [1, 1]} : vector<8x64xf32> to vector<8x32xf32>
    %35 = arith.mulf %30, %34 : vector<8x32xf32>
    %36 = arith.addf %28, %35 : vector<8x32xf32>
    %37 = tpu.concatenate %33, %36 in 1 : vector<8x32xf32>, vector<8x32xf32> -> vector<8x64xf32>
    %c0_22 = arith.constant 0 : index
    %c0_23 = arith.constant 0 : index
    %38 = vector.load %arg8[%c0_22, %c0_23] : memref<8x64xf32, #tpu.memory_space<vmem>>, vector<8x64xf32>
    tpu.vector_store %arg8[%c0_22, %c0_23], %37 {strides = array<i32>} : memref<8x64xf32, #tpu.memory_space<vmem>>, vector<8x64xf32>,
    return
  }
  func.func @transform_0(%arg0: i32) -> (i32, i32) {
    %c0_i32 = arith.constant 0 : i32
    %c0_i32_0 = arith.constant 0 : i32
    return %arg0, %c0_i32 : i32, i32
  }
  func.func @transform_1(%arg0: i32) -> (i32, i32) {
    %c0_i32 = arith.constant 0 : i32
    %c0_i32_0 = arith.constant 0 : i32
    return %arg0, %c0_i32 : i32, i32
  }
  func.func @transform_2(%arg0: i32) -> (i32, i32) {
    %c0_i32 = arith.constant 0 : i32
    %c0_i32_0 = arith.constant 0 : i32
    %c0_i32_1 = arith.constant 0 : i32
    return %c0_i32, %c0_i32_0 : i32, i32
  }
  func.func @transform_3(%arg0: i32) -> (i32, i32) {
    %c0_i32 = arith.constant 0 : i32
    %c0_i32_0 = arith.constant 0 : i32
    %c0_i32_1 = arith.constant 0 : i32
    return %c0_i32, %c0_i32_0 : i32, i32
  }
  func.func @transform_4(%arg0: i32) -> (i32, i32) {
    %c0_i32 = arith.constant 0 : i32
    %c0_i32_0 = arith.constant 0 : i32
    %c0_i32_1 = arith.constant 0 : i32
    return %c0_i32, %c0_i32_0 : i32, i32
  }
  func.func @transform_5(%arg0: i32) -> (i32, i32) {
    %c0_i32 = arith.constant 0 : i32
    %c0_i32_0 = arith.constant 0 : i32
    %c0_i32_1 = arith.constant 0 : i32
    return %c0_i32, %c0_i32_0 : i32, i32
  }
  func.func @transform_6(%arg0: i32) -> (i32, i32) {
    %c0_i32 = arith.constant 0 : i32
    %c0_i32_0 = arith.constant 0 : i32
    %c0_i32_1 = arith.constant 0 : i32
    return %c0_i32, %c0_i32_0 : i32, i32
  }
  func.func @transform_7(%arg0: i32) -> (i32, i32) {
    %c0_i32 = arith.constant 0 : i32
    %c0_i32_0 = arith.constant 0 : i32
    return %arg0, %c0_i32 : i32, i32
  }
}

</mosaic_0001>

<bundles_post_ra>
// kernel: tpu_custom_call.1
= control target key start
LH: loop header
LB: loop body
LE: loop exit
PB: predicated region body
PF: predicated region fallthrough
CT: control target
= control target key end

     0   :  { %s1567_s0 = inlined_call_operand.hbm [shape: f32[16,32], index: 0, kind: input, shape index: {}]   ;;  %s1568_s1 = inlined_call_operand.hbm [shape: f32[16,32], index: 1, kind: input, shape index: {}]   ;;  %s1569_s2 = inlined_call_operand.hbm [shape: f32[32,32], index: 2, kind: input, shape index: {}]   ;;  %s1570_s3 = inlined_call_operand.hbm [shape: f32[32,32], index: 3, kind: input, shape index: {}]   ;;  %s1571_s4 = inlined_call_operand.vmem [shape: f32[1,32], index: 4, kind: input, shape index: {}]   ;;  %s1572_s5 = inlined_call_operand.hbm [shape: f32[32,96], index: 5, kind: input, shape index: {}]   ;;  %s1573_s6 = inlined_call_operand.vmem [shape: f32[1,96], index: 6, kind: input, shape index: {}]   ;;  %s1574_s7 = inlined_call_operand.hbm [shape: f32[16,64], index: 7, kind: output, shape index: {}]  }
   0x1   :  { %1580 = sst [smem:[#allocation18_spill]] %s1569_s2 }
   0x2   :  { %1581 = sst [smem:[#allocation19_spill]] %s1570_s3 }
   0x3   :  { %1582 = sst [smem:[#allocation20_spill]] %s1572_s5 }
   0x4   :  { %12 = vsyncpa [#allocation3], 0 }
   0x5   :  { %14 = vsyncpa [#allocation3 + $0x1], 0 }
   0x6   :  { %15 = vsyncpa [#allocation6], 0 }
   0x7   :  { %17 = vsyncpa [#allocation6 + $0x1], 0 }
   0x8   :  { %18 = vsyncpa [#allocation9], 0 }
   0x9   :  { %19 = vsyncpa [#allocation4], 0 }
   0xa   :  { %21 = vsyncpa [#allocation4 + $0x1], 0  ;;  %s1248_s24 = smov 0   ;;  %s1250_s25 = smov 0  }
   0xb   :  { %s1252_s26 = smov 0   ;;  %s1254_s27 = smov 0  }
   0xc LB: > { %s1269_s28 = sadd.s32 4294967295, %s1192_s27   ;;  %s784_s29 = sadd.s32 4294967294, %s1192_s27   ;;  %s1192_s27 = sphi %s1254_s27, %s1608_s27   ;;  %s1188_s26 = sphi %s1252_s26, %s1607_s26   ;;  %s1184_s25 = sphi %s1250_s25, %s1606_s25   ;;  %s1180_s24 = sphi %s1248_s24, %s1605_s24  }
   0xd   : > { %p47_p0 = scmp.ne.s32.totalorder %s1184_s25, %s1180_s24  ;;  %p1575_p1 = scmp.eq.s32.totalorder %s1269_s28, 0 }
   0xe   : > { %p208_p3 = scmp.eq.s32.totalorder %s784_s29, 1  ;;  %p785_p5 = scmp.ge.s32.totalorder %s1192_s27, 1 }
   0xf   : > { %p1278_p4 = por %p1575_p1, %p47_p0  ;;  %p215_p7 = scmp.lt.s32.totalorder %s1192_s27, 3 }
  0x10   : > { %p1283_p6 = por %p208_p3, %p47_p0  ;;  %s1194_s10 = smov [#allocation7]  }
  0x11   : > { %s1583_s30 = scalar_select %p1278_p4, 1, 0 }
  0x12   : > { %s1584_s8 = scalar_select %p1283_p6, 1, 0 }
  0x13   : > { %p1288_p8 = pnand %p785_p5, %p215_p7  ;;  %s227_s11 = sshll.u32 %s1194_s10, 4  ;;  %s1292_s11 = int_to_ptr.vmem [resolvable:$true] %s227_s11 }
  0x14   : > { %1585 = sst [smem:[#allocation17_spill]] %s1584_s8  ;;  %s1195_s13 = smov [#allocation8]  }
  0x15   : > { %s1586_s9 = scalar_select %p1288_p8, 1, 0 }
  0x16   : > { %p894_p9 = pneg %p1288_p8  ;;  %s240_s14 = sshll.u32 %s1195_s13, 4  ;;  %s1303_s14 = int_to_ptr.vmem [resolvable:$true] %s240_s14 }
  0x17   : > { %s1196_s15 = smov [#allocation10]   ;;  %s1588_s2 = sld [smem:[#allocation18_spill]] }
  0x18   : > { %p1299_p11 = pnand %p894_p9, %p1575_p1  ;;  %s1305_s16 = sshll.u32 %s1196_s15, 4  ;;  %s257_s16 = int_to_ptr.vmem [resolvable:$true] %s1305_s16 }
  0x1a   : > { %p1315_p13 = pneg %p1299_p11 }
  0x1d   : > { %s970_s19 = scalar_lea.hbm %s1588_s2, 512 }
  0x1e   : > { %p971_p12 = scmp.ne.s32.totalorder %s1588_s2, %s970_s19  ;;  %p977_p5 = scmp.lt.u32.totalorder %s970_s19, %s1588_s2 }
  0x20   : > { %p973_p0 = pnand %p1315_p13, %p971_p12 }
  0x22   : > { %p974_p3 = pneg %p973_p0 }
  0x24   : > { %p979_p7 = pnand %p977_p5, %p974_p3 }
  0x26   : > { %982 = shalt.err (!%p979_p7)
}
  0x27   : > { %s983_s10 = scalar_lea.vmem %s1292_s11, 512  ;;  %p991_p2 = scmp.lt.s32.totalorder %s1292_s11, %s1292_s11 }
  0x28   : > { %p984_p9 = scmp.ne.s32.totalorder %s1292_s11, %s983_s10  ;;  %p992_p6 = scmp.lt.s32.totalorder %s983_s10, %s983_s10 }
  0x2a   : > { %p986_p10 = pnand %p984_p9, %p1315_p13  ;;  %p993_p12 = por %p992_p6, %p991_p2 }
  0x2c   : > { %p987_p1 = pneg %p986_p10 }
  0x2e   : > { %p994_p0 = pnand %p993_p12, %p987_p1 }
  0x30   : > { %997 = shalt.err (!%p994_p0)
}
  0x31   : > { %s1197_s13 = smov 128   ;;  %s1198_s15 = smov 8  }
  0x32   : > { %897 = dma.hbm_to_vmem [thread:$0]  (!%p1299_p11), %s1588_s2, 512, %s1292_s11, [#allocation6], %s1197_s13, %s1197_s13, %s1198_s15  }
  0x33   : > { %s1590_s3 = sld [smem:[#allocation19_spill]] }
  0x39   : > { %s998_s21 = scalar_lea.hbm %s1590_s3, 512 }
  0x3a   : > { %p999_p1 = scmp.ne.s32.totalorder %s1590_s3, %s998_s21  ;;  %p1005_p10 = scmp.lt.u32.totalorder %s998_s21, %s1590_s3 }
  0x3c   : > { %p1001_p2 = pnand %p999_p1, %p1315_p13 }
  0x3e   : > { %p1002_p6 = pneg %p1001_p2 }
  0x40   : > { %p1007_p3 = pnand %p1005_p10, %p1002_p6 }
  0x42   : > { %1010 = shalt.err (!%p1007_p3)
}
  0x43   : > { %s1011_s11 = scalar_lea.vmem %s1303_s14, 512  ;;  %p1019_p12 = scmp.lt.s32.totalorder %s1303_s14, %s1303_s14 }
  0x44   : > { %p1012_p5 = scmp.ne.s32.totalorder %s1303_s14, %s1011_s11  ;;  %p1020_p0 = scmp.lt.s32.totalorder %s1011_s11, %s1011_s11 }
  0x46   : > { %p1014_p7 = pnand %p1012_p5, %p1315_p13  ;;  %p1021_p1 = por %p1020_p0, %p1019_p12 }
  0x48   : > { %p1015_p9 = pneg %p1014_p7 }
  0x4a   : > { %p1022_p2 = pnand %p1021_p1, %p1015_p9 }
  0x4c   : > { %1025 = shalt.err (!%p1022_p2)
}
  0x4d   : > { %900 = dma.hbm_to_vmem [thread:$0]  (!%p1299_p11), %s1590_s3, 512, %s1303_s14, [#allocation9], %s1197_s13, %s1197_s13, %s1198_s15  }
  0x4e   : > { %s1591_s5 = sld [smem:[#allocation20_spill]] }
  0x54   : > { %s1026_s20 = scalar_lea.hbm %s1591_s5, 512 }
  0x55   : > { %p1027_p6 = scmp.ne.s32.totalorder %s1591_s5, %s1026_s20  ;;  %p1033_p5 = scmp.lt.u32.totalorder %s1026_s20, %s1591_s5 }
  0x57   : > { %p1029_p10 = pnand %p1027_p6, %p1315_p13 }
  0x59   : > { %p1030_p3 = pneg %p1029_p10 }
  0x5b   : > { %p1035_p7 = pnand %p1033_p5, %p1030_p3 }
  0x5d   : > { %1038 = shalt.err (!%p1035_p7)
}
  0x5e   : > { %s1039_s11 = scalar_lea.vmem %s257_s16, 512  ;;  %p1047_p1 = scmp.lt.s32.totalorder %s257_s16, %s257_s16 }
  0x5f   : > { %p1040_p9 = scmp.ne.s32.totalorder %s257_s16, %s1039_s11  ;;  %p1048_p2 = scmp.lt.s32.totalorder %s1039_s11, %s1039_s11 }
  0x61   : > { %p1042_p12 = pnand %p1040_p9, %p1315_p13  ;;  %p1049_p4 = por %p1048_p2, %p1047_p1 }
  0x63   : > { %p1043_p0 = pneg %p1042_p12 }
  0x65   : > { %p1050_p8 = pnand %p1049_p4, %p1043_p0 }
  0x67   : > { %1053 = shalt.err (!%p1050_p8)
}
  0x68   : > { %903 = dma.hbm_to_vmem [thread:$0]  (!%p1299_p11), %s1591_s5, 512, %s257_s16, [#allocation9], %s1197_s13, %s1197_s13, %s1198_s15  }
  0x69   : > { %s1388_s22 = sadd.s32 1, %s1192_s27   ;;  %s34_s17 = sadd.s32 1, %s1188_s26 }
  0x6a   : > { %s31_s12 = ssub.s32 %s1192_s27, %s1388_s22  ;;  %p41_p8 = scmp.ne.s32.totalorder %s1188_s26, %s1184_s25 }
  0x6b   : > { %p32_p4 = scmp.eq.s32.totalorder %s31_s12, 0  ;;  %p42_p13 = scmp.eq.s32.totalorder %s1192_s27, 0 }
  0x6c   : > { %p918_p6 = scmp.lt.s32.totalorder %s1192_s27, 2  ;;  %p1592_p3 = scmp.eq.s32.totalorder %s1269_s28, 1 }
  0x6d   : > { %s1398_s18 = scalar_select %p32_p4, %s1188_s26, %s34_s17  }
  0x6e   : > { %p43_p10 = por %p42_p13, %p41_p8  ;;  %p1402_p5 = por %p1592_p3, %p41_p8 }
  0x6f   : > { %s273_s20 = sand.u32 1, %s1188_s26   ;;  %s791_s21 = sshll.u32 %s1192_s27, 7 }
  0x70   : > { %s1593_s19 = scalar_select %p1402_p5, 1, 0 }
  0x71   : > { %s1408_s16 = sshll.u32 %s273_s20, 3  ;;  %s1413_s23 = scalar_lea.hbm %s1567_s0, %s791_s21 }
  0x72   : > { %s277_s29 = scalar_lea.vmem [#allocation2], %s1408_s16  ;;  %p1416_p11 = pnand %p918_p6, %p43_p10 }
  0x73   : > { %s284_s10 = sshll.u32 %s277_s29, 4  ;;  %s1425_s12 = scalar_lea.hbm %s1568_s1, %s791_s21  ;;  %s1420_s10 = int_to_ptr.vmem [resolvable:$true] %s284_s10 }
  0x74   : > { %s274_s17 = scalar_lea.sflag [#allocation3], %s273_s20  ;;  %s1054_s13 = scalar_lea.hbm %s1413_s23, 128 }
  0x75   : > { %p1055_p7 = scmp.ne.s32.totalorder %s1413_s23, %s1054_s13  ;;  %p1056_p9 = pneg %p1416_p11 }
  0x76   : > { %s1059_s2 = scalar_lea.hbm %s1567_s0, 256  ;;  %p1060_p1 = scmp.lt.u32.totalorder %s1413_s23, %s1567_s0 }
  0x77   : > { %p1057_p12 = pnand %p1056_p9, %p1055_p7  ;;  %p1061_p2 = scmp.lt.u32.totalorder %s1059_s2, %s1054_s13 }
  0x78   : > { %p1063_p8 = scmp.lt.u32.totalorder %s1054_s13, %s1413_s23 }
  0x79   : > { %p1058_p0 = pneg %p1057_p12  ;;  %p1062_p4 = por %p1061_p2, %p1060_p1 }
  0x7b   : > { %p1064_p13 = por %p1063_p8, %p1062_p4 }
  0x7d   : > { %p1065_p6 = pnand %p1064_p13, %p1058_p0 }
  0x7f   : > { %1068 = shalt.err (!%p1065_p6)
}
  0x80   : > { %s1069_s20 = scalar_lea.vmem %s1420_s10, 128  ;;  %s1199_s21 = smov [#allocation2]  }
  0x81   : > { %p1070_p10 = scmp.ne.s32.totalorder %s1420_s10, %s1069_s20  ;;  %s1074_s14 = sshll.u32 %s1199_s21, 4  ;;  %s1075_s14 = int_to_ptr.vmem [resolvable:$false] %s1074_s14 }
  0x82   : > { %s1076_s3 = scalar_lea.vmem %s1075_s14, 256  ;;  %p1077_p12 = scmp.lt.s32.totalorder %s1420_s10, %s1075_s14 }
  0x83   : > { %p1072_p3 = pnand %p1070_p10, %p1056_p9  ;;  %p1078_p1 = scmp.lt.s32.totalorder %s1076_s3, %s1069_s20 }
  0x85   : > { %p1073_p7 = pneg %p1072_p3  ;;  %p1079_p2 = por %p1078_p1, %p1077_p12 }
  0x87   : > { %p1080_p4 = pnand %p1079_p2, %p1073_p7 }
  0x89   : > { %1083 = shalt.err (!%p1080_p4)
}
  0x8a   : > { %907 = dma.hbm_to_vmem [thread:$0]  (!%p1416_p11), %s1413_s23, 128, %s1420_s10, %s274_s17  }
  0x8b   : > { %s291_s2 = sand.u32 1, %s1192_s27   ;;  %s295_s5 = scalar_lea.vmem [#allocation5], %s1408_s16 }
  0x8c   : > { %s302_s8 = sshll.u32 %s295_s5, 4  ;;  %s292_s13 = scalar_lea.sflag [#allocation6], %s291_s2  ;;  %s303_s8 = int_to_ptr.vmem [resolvable:$true] %s302_s8 }
  0x8d   : > { %s1084_s15 = scalar_lea.hbm %s1425_s12, 128  ;;  %s1089_s21 = scalar_lea.hbm %s1568_s1, 256 }
  0x8e   : > { %p1085_p0 = scmp.ne.s32.totalorder %s1425_s12, %s1084_s15  ;;  %p1090_p6 = scmp.lt.u32.totalorder %s1425_s12, %s1568_s1 }
  0x8f   : > { %p1091_p10 = scmp.lt.u32.totalorder %s1089_s21, %s1084_s15  ;;  %p1093_p7 = scmp.lt.u32.totalorder %s1084_s15, %s1425_s12 }
  0x90   : > { %p1087_p8 = pnand %p1085_p0, %p1056_p9 }
  0x91   : > { %p1092_p3 = por %p1091_p10, %p1090_p6 }
  0x92   : > { %p1088_p13 = pneg %p1087_p8 }
  0x93   : > { %p1094_p12 = por %p1093_p7, %p1092_p3 }
  0x95   : > { %p1095_p1 = pnand %p1094_p12, %p1088_p13 }
  0x97   : > { %1098 = shalt.err (!%p1095_p1)
}
  0x98   : > { %s1099_s16 = scalar_lea.vmem %s303_s8, 128  ;;  %s1200_s23 = smov [#allocation5]  }
  0x99   : > { %p1100_p2 = scmp.ne.s32.totalorder %s303_s8, %s1099_s16  ;;  %s1104_s10 = sshll.u32 %s1200_s23, 4  ;;  %s1105_s10 = int_to_ptr.vmem [resolvable:$false] %s1104_s10 }
  0x9a   : > { %s1106_s17 = scalar_lea.vmem %s1105_s10, 256  ;;  %p1107_p8 = scmp.lt.s32.totalorder %s303_s8, %s1105_s10 }
  0x9b   : > { %p1102_p4 = pnand %p1100_p2, %p1056_p9  ;;  %p1108_p5 = scmp.lt.s32.totalorder %s1106_s17, %s1099_s16 }
  0x9d   : > { %p1103_p0 = pneg %p1102_p4  ;;  %p1109_p6 = por %p1108_p5, %p1107_p8 }
  0x9f   : > { %p1110_p10 = pnand %p1109_p6, %p1103_p0 }
  0xa1   : > { %1113 = shalt.err (!%p1110_p10)
}
  0xa2   : > { %910 = dma.hbm_to_vmem [thread:$0]  (!%p1416_p11), %s1425_s12, 128, %s303_s8, %s292_s13  }
  0xa3   : > { %p1595_p13 = scmp.ne.s32.totalorder %s1586_s9, 0 }
  0xa4   : > { %s1476_s2 = sand.u32 (!%p1595_p13), 1, %s1184_s25   ;;  %p1596_p5 = scmp.ne.s32.totalorder (!%p1595_p13), %s1583_s30, 0 }
  0xa5   : > { %311 = sbr.rel (%p1595_p13) target bundleno = 886 (0x376), region = 48  ;;  %s1479_s5 = sshll.u32 (!%p1595_p13), %s1476_s2, 3 }
  0xa6   : > { %s314_s15 = scalar_lea.sflag (!%p1595_p13), [#allocation3], %s1476_s2  ;;  %s317_s29 = scalar_lea.vmem (!%p1595_p13), [#allocation2], %s1479_s5 }
  0xac   : > { %1159 = dma.done.wait (%p1596_p5), %s314_s15, 128  }
  0xad   : > { %1161 = vsyncadd (%p1596_p5), %s314_s15, 4294967168  ;;  %s322_s9 = sand.u32 1, %s1269_s28   ;;  %s326_s12 = scalar_lea.vmem [#allocation5], %s1479_s5 }
  0xae   : > { %s323_s11 = scalar_lea.sflag [#allocation6], %s322_s9 }
  0xaf   : > { %1163 = dma.done.wait (%p1596_p5), %s323_s11, 128  }
  0xb0   : > { %1165 = vsyncadd (%p1596_p5), %s323_s11, 4294967168  ;;  %p1597_p11 = scmp.eq.s32.totalorder %s1269_s28, 0 }
  0xb2   : > { %1167 = dma.done.wait (%p1597_p11), [#allocation6], 512   ;;  %p1598_p9 = pmov %p1597_p11 }
  0xb4   : > { %1169 = vsyncadd (%p1598_p9), [#allocation6], 4294966784  ;;  %p1599_p3 = pmov %p1598_p9 }
  0xb6   : > { %1171 = dma.done.wait (%p1599_p3), [#allocation9], 1024   ;;  %p1600_p7 = pmov %p1599_p3 }
  0xb7   : > { %v1201_v0 = vmov 0.0|0.0   ;;  %vm1202_vm0 = vmmov 0   ;;  %v1203_v1 = vmov 0.0   ;;  %v380_v2 = vld [vmem:[#allocation8] sm:$0xff]  ;;  %v381_v3 = vld [vmem:[#allocation8 + $0x8] sm:$0xff]  ;;  %v382_v7 = vld [vmem:[#allocation8 + $0x10] sm:$0xff] }
  0xb8   : > { %1173 = vsyncadd (%p1600_p7), [#allocation9], 4294966272  ;;  %858 = vmatprep.subr.bf16.mxu0 %v1201_v0  ;;  %864 = vmatprep.subr.bf16.mxu1 %v1201_v0  ;;  %v376_v4 = vld [vmem:[#allocation7] sm:$0xff]  ;;  %v859_v5 = vpack.c.bf16 %v381_v3, %v380_v2  ;;  %v377_v6 = vld [vmem:[#allocation7 + $0x8] sm:$0xff]  ;;  %vm384_vm1 = vcmask 261120   ;;  %s1204_s21 = smov 64  }
  0xb9   : > { %833 = vmatprep.mubr.msk.f32.mxu0 %vm1202_vm0, %v1203_v1  ;;  %844 = vmatprep.mubr.msk.f32.mxu1 %vm1202_vm0, %v1203_v1  ;;  %v383_v8 = vld [vmem:[#allocation8 + $0x18] sm:$0xff]  ;;  %v865_v9 = vpack.c.bf16 %v377_v6, %v376_v4  ;;  %v378_v10 = vld [vmem:[#allocation7 + $0x10] sm:$0xff]  ;;  %v374_v15 = vld [vmem:[%s317_s29] sm:$0xff]  ;;  %s1205_s14 = smov 96   ;;  %s1206_s3 = smov 32   ;;  %vm647_vm2 = vcmask 523264  }
  0xba   : > { %v379_v11 = vld [vmem:[#allocation7 + $0x18] sm:$0xff]  ;;  %860 = vmatpush3.bf16.msra.mxu0 %v859_v5  ;;  %v862_v12 = vpack.c.bf16 %v383_v8, %v382_v7  ;;  %v540_v16 = vld [vmem:[#allocation10] sm:$0xff]  ;;  %v541_v17 = vld [vmem:[#allocation10 + $0x8] sm:$0xff]  ;;  %s807_s16 = sshll.u32 %s1269_s28, 7  ;;  %s373_s23 = scalar_lea.vmem [#allocation11], %s1479_s5 }
  0xbb   : > { %866 = vmatpush3.bf16.msra.mxu1 %v865_v9  ;;  %861 = vmatprep.subr.bf16.mxu0 %v1201_v0  ;;  %v868_v13 = vpack.c.bf16 %v379_v11, %v378_v10  ;;  %v375_v14 = vld [vmem:[%s326_s12] sm:$0xff]  ;;  %v871_v18 = vpack.c.bf16 %v541_v17, %v540_v16  ;;  %v803_v24 = vld [vmem:[%s1571_s4] ss:$0 sm:$0xff]  ;;  %s663_s10 = sshll.u32 %s373_s23, 4  ;;  %s1522_s29 = scalar_lea.hbm %s1574_s7, %s807_s16  ;;  %s1524_s10 = int_to_ptr.vmem [resolvable:$true] %s663_s10 }
  0xbc   : > { %867 = vmatprep.subr.bf16.mxu1 %v1201_v0  ;;  %v542_v19 = vld [vmem:[#allocation10 + $0x10] sm:$0xff]  ;;  %v543_v20 = vld [vmem:[#allocation10 + $0x18] sm:$0xff]  ;;  %v804_v30 = vld [vmem:[%s1573_s6] ss:$0 sm:$0xff]  ;;  %s650_s9 = scalar_lea.sflag [#allocation4], %s1476_s2  ;;  %s1114_s11 = scalar_lea.vmem %s1524_s10, 128 }
  0xbd   : > { %v874_v21 = vpack.c.bf16 %v543_v20, %v542_v19  ;;  %p1115_p12 = scmp.ne.s32.totalorder %s1524_s10, %s1114_s11  ;;  %p1601_p1 = scmp.ne.s32.totalorder %s1593_s19, 0 }
  0xbe   : > { %863 = vmatpush3.bf16.msra.mxu0 %v862_v12  ;;  %s1207_s28 = smov [#allocation11]  }
  0xbf   : > { %869 = vmatpush3.bf16.msra.mxu1 %v868_v13  ;;  %870 = vmatprep.subr.bf16.mxu0 %v1201_v0  ;;  %p1116_p2 = pnand %p1115_p12, %p1601_p1  ;;  %s1118_s5 = sshll.u32 %s1207_s28, 4  ;;  %s1119_s5 = int_to_ptr.vmem [resolvable:$false] %s1118_s5 }
  0xc0   : > { %s1120_s12 = scalar_lea.vmem %s1119_s5, 256  ;;  %p1121_p0 = scmp.lt.s32.totalorder %s1524_s10, %s1119_s5 }
  0xc1   : > { %834 = vmatmul.mubr.msk.f32.vlgmr.msra.gmra.mrb[0].mxu0 %vm384_vm1, %v375_v14  ;;  %p1117_p4 = pneg %p1116_p2  ;;  %p1122_p8 = scmp.lt.s32.totalorder %s1120_s12, %s1114_s11 }
  0xc2   : > { %845 = vmatmul.mubr.msk.f32.vlgmr.msra.gmra.mrb[0].mxu1 %vm384_vm1, %v374_v15  ;;  %855 = vmatprep.mubr.msk.f32.mxu0 %vm1202_vm0, %v1203_v1 }
  0xc3   : > { %872 = vmatpush3.bf16.msra.mxu0 %v871_v18  ;;  %p1123_p6 = por %p1122_p8, %p1121_p0 }
  0xc4   : > { %873 = vmatprep.subr.bf16.mxu0 %v1201_v0 }
  0xc5   : > { %p1124_p10 = pnand %p1123_p6, %p1117_p4 }
  0xc7   : > { %875 = vmatpush3.bf16.msra.mxu0 %v874_v21 }
 0x194   : > { %v454_v22 = vpop.f32.mrb[0].mxu0 }
 0x195   : > { %v527_v23 = vpop.f32.mrb[0].mxu1  ;;  %v835_v25 = vpop.f32.mrb[1].mxu0 }
 0x196   : > { %v528_v26 = vadd.f32 %v527_v23, %v454_v22  ;;  %v846_v27 = vpop.f32.mrb[1].mxu1 }
 0x198   : > { %v538_v28 = vadd.f32 %v803_v24, %v528_v26 }
 0x19a   : > { %v539_v29 = vmax.f32 %v538_v28, 0.0 }
 0x19c   : > { %856 = vmatmul.mubr.msk.f32.vlgmr.msra.gmra.mrb[2].mxu0 %vm384_vm1, %v539_v29 }
 0x26f   : > { %v620_v31 = vpop.f32.mrb[2].mxu0 }
 0x270   : > { %v621_v32 = vadd.f32 %v804_v30, %v620_v31  ;;  %v857_v33 = vpop.f32.mrb[3].mxu0 }
 0x272   : > { %966 = vtanh.f32 %v621_v32  ;;  %v625_v35 = vmul.f32 0.5, %v621_v32 }
 0x274   : > { %968 = vtanh.f32 %v625_v35 }
 0x27c   : > { %v967_v34 = vpop.eup %966 }
 0x27d   : > { %637 = vrot.lane.b32.xlu0 %v967_v34, %s1204_s21 }
 0x27e   : > { %v969_v36 = vpop.eup %968 }
 0x27f   : > { %v627_v37 = vadd.f32 1.0, %v969_v36 }
 0x281   : > { %632 = vrot.lane.b32.xlu0 %v967_v34, %s1205_s14  ;;  %v628_v38 = vmul.f32 0.5, %v627_v37 }
 0x283   : > { %v630_v39 = vsub.f32 1.0, %v628_v38  ;;  %v629_v42 = vmul.f32 %v628_v38, %v374_v15 }
 0x2ef   : > { %v638_v40 = vpop.permute.xlu0 %637 }
 0x2f0   : > { %v640_v41 = vmul.f32 %v638_v40, %v630_v39 }
 0x2f2   : > { %v641_v43 = vadd.f32 %v640_v41, %v629_v42 }
 0x2f3   : > { %v633_v44 = vpop.permute.xlu0 %632 }
 0x2f4   : > { %v635_v45 = vmul.f32 %v633_v44, %v630_v39  ;;  %643 = vrot.lane.b32.xlu1 %v641_v43, %s1206_s3 }
 0x2f6   : > { %v636_v46 = vadd.f32 %v635_v45, %v629_v42 }
 0x366   : > { %v644_v47 = vpop.permute.xlu1 %643 }
 0x367   : > { %v646_v48 = vsel %vm384_vm1, %v636_v46, %v644_v47 }
 0x368   : > { %648 = vst.msk [vmem:[%s373_s23] sm:$0xff] %vm647_vm2, %v646_v48 }
 0x369   : > { %1127 = shalt.err (!%p1124_p10)
}
 0x36a   : > { %s1128_s2 = scalar_lea.hbm %s1522_s29, 128  ;;  %s1132_s13 = scalar_lea.hbm %s1574_s7, 256 }
 0x36b   : > { %p1129_p13 = scmp.ne.s32.totalorder %s1522_s29, %s1128_s2  ;;  %p1133_p9 = scmp.lt.u32.totalorder %s1522_s29, %s1574_s7 }
 0x36c   : > { %p1134_p3 = scmp.lt.u32.totalorder %s1132_s13, %s1128_s2  ;;  %p1136_p12 = scmp.lt.u32.totalorder %s1128_s2, %s1522_s29 }
 0x36d   : > { %p1130_p5 = pnand %p1129_p13, %p1601_p1 }
 0x36e   : > { %p1135_p7 = por %p1134_p3, %p1133_p9 }
 0x36f   : > { %p1131_p11 = pneg %p1130_p5 }
 0x370   : > { %p1137_p2 = por %p1136_p12, %p1135_p7 }
 0x372   : > { %p1138_p4 = pnand %p1137_p2, %p1131_p11 }
 0x374   : > { %1141 = shalt.err (!%p1138_p4)
}
 0x375   : > { %892 = dma.vmem_to_hbm [thread:$0]  (%p1601_p1), %s1524_s10, 128, %s1522_s29, %s650_s9  }
 0x376 PF: > { %s1602_s14 = sld [smem:[#allocation17_spill]]  ;;  %s675_s3 = sand.u32 1, %s1180_s24  }
 0x377   : > { %p1604_p8 = scmp.ge.s32.totalorder %s1192_s27, 2  ;;  %s676_s16 = scalar_lea.sflag [#allocation4], %s675_s3 }
 0x37c   : > { %p1603_p0 = scmp.ne.s32.totalorder %s1602_s14, 0 }
 0x37e   : > { %p912_p6 = pnand %p1604_p8, %p1603_p0 }
 0x380   : > { %1175 = dma.done.wait (!%p912_p6), %s676_s16, 128  }
 0x381   : > { %1177 = vsyncadd (!%p912_p6), %s676_s16, 4294967168  ;;  %p24_p10 = scmp.ge.s32.totalorder %s1388_s22, 4   ;;  %s1605_s24 = smov %s1184_s25 }
 0x382   : > { %s1606_s25 = smov %s1188_s26  ;;  %s1607_s26 = smov %s1398_s18 }
 0x383   : > { %s1608_s27 = smov %s1388_s22  ;;  %26 = sbr.rel (!%p24_p10) target bundleno = 12 (0xc), region = 118 }
 0x38a   :  { %681 = vsyncpa [#allocation3], 1 }
 0x38b   :  { %683 = vsyncpa [#allocation3 + $0x1], 1 }
 0x38c   :  { %684 = vsyncpa [#allocation6], 1 }
 0x38d   :  { %686 = vsyncpa [#allocation6 + $0x1], 1 }
 0x38e   :  { %687 = vsyncpa [#allocation9], 1 }
 0x38f   :  { %688 = vsyncpa [#allocation4], 1 }
 0x390   :  { %690 = vsyncpa [#allocation4 + $0x1], 1 }

</bundles_post_ra>
